<compile_context>
chip_gen: v7x
topology: tpu7x:2x2x1
jax: 0.10.0
libtpu: 0.0.40
codegen_flags: <defaults>
</compile_context>

<pallas_src>
import itertools
import math

import jax
import jax.numpy as jnp
from jax.experimental import pallas as pl
from jax.experimental.pallas import tpu as pltpu


# ---------------------------------------------------------------------------
# Hardware-derived sizing
# ---------------------------------------------------------------------------
def _vmem_capacity_bytes():
    try:
        return int(pltpu.get_tpu_info().vmem_capacity_bytes)
    except Exception:
        return 64 << 20  # conservative fallback: v7x per-TC physical VMEM


_VMEM_CAP = _vmem_capacity_bytes()
_VMEM_BUDGET = _VMEM_CAP // 3       # leave headroom for compiler scratch

_ROW_TILE = 1024                    # rows (or columns, fm path) per grid step
_MIN_GRID_BLOCKS = 8                # only go tiled with >= 8 blocks (>=4/TC on v7x)


def _pad_to(v, m):
    return ((v + m - 1) // m) * m


def _per_row_vmem_bytes(f, bsz, x_itemsize):
    # Row-major: x pads its 'f' lanes to 128; output is f32 and pads 'bsz' to 128.
    return _pad_to(f, 128) * x_itemsize + _pad_to(bsz, 128) * 4


def _gridless_row_limit(f, bsz, x_itemsize):
    vmem_rows = _VMEM_BUDGET // _per_row_vmem_bytes(f, bsz, x_itemsize)
    return int(min(_ROW_TILE * _MIN_GRID_BLOCKS, vmem_rows))


def _gridless_vmem_limit(needed_bytes):
    # Never below the platform scoped default, never above physical VMEM.
    return int(min(_VMEM_CAP, max(needed_bytes + (8 << 20), 32 << 20)))


# ---------------------------------------------------------------------------
# Kernels
# ---------------------------------------------------------------------------
def _box_decoder_kernel(x_ref, w_ref, b_ref, o_ref):
    """o(N, B) = tanh(x(N, F) @ w(F, B) + b(1, B)).

    x/w may be f32 or bf16 (MXU operands); accumulate, bias add and tanh are f32.
    """
    acc = jnp.dot(x_ref[...], w_ref[...], preferred_element_type=jnp.float32)  # MXU
    o_ref[...] = jnp.tanh(acc + b_ref[...]).astype(o_ref.dtype)                # VPU + EUP


def _box_decoder_fm_kernel(x_ref, w_ref, b_ref, o_ref):
    """Feature-major: o(B, N) = tanh(w(B, F) @ x(F, N) + b(B, 1)).

    N lives in the lane (last) dimension for both x and o -> lane-dense stores.
    """
    acc = jnp.dot(w_ref[...], x_ref[...], preferred_element_type=jnp.float32)
    o_ref[...] = jnp.tanh(acc + b_ref[...]).astype(o_ref.dtype)


# ---------------------------------------------------------------------------
# pallas_call wrappers
# ---------------------------------------------------------------------------
def box_decoder_matmul(x, weight_t, bias_row):
    """tanh(x @ weight_t + bias_row).  x: (N, F), weight_t: (F, B), bias_row: (1, B)."""
    n, f = x.shape
    bsz = weight_t.shape[1]
    w = weight_t.astype(x.dtype)          # MXU operands share the activation dtype
    b = bias_row.astype(jnp.float32)      # epilogue stays f32 (v5e: no bf16 VPU/EUP)
    x_isz = jnp.dtype(x.dtype).itemsize

    cost = pl.CostEstimate(
        flops=2 * n * f * bsz,
        transcendentals=n * bsz,
        bytes_accessed=x_isz * n * f + x_isz * f * bsz + 4 * bsz + 4 * n * bsz,
    )

    if n <= _gridless_row_limit(f, bsz, x_isz):
        # Gridless: whole arrays resident in VMEM, no pipeline scaffolding.
        needed = n * _per_row_vmem_bytes(f, bsz, x_isz) + (1 << 20)
        return pl.pallas_call(
            _box_decoder_kernel,
            out_shape=jax.ShapeDtypeStruct((n, bsz), jnp.float32),
            in_specs=[pl.BlockSpec(memory_space=pltpu.MemorySpace.VMEM)] * 3,
            out_specs=pl.BlockSpec(memory_space=pltpu.MemorySpace.VMEM),
            compiler_params=pltpu.CompilerParams(
                vmem_limit_bytes=_gridless_vmem_limit(needed)),
            cost_estimate=cost,
        )(x, w, b)

    # Row-tiled path: only reached with >= _MIN_GRID_BLOCKS blocks, so per-step
    # overhead is amortized and the grid can shard across v7x's 2 TensorCores.
    tm = _ROW_TILE
    return pl.pallas_call(
        _box_decoder_kernel,
        out_shape=jax.ShapeDtypeStruct((n, bsz), jnp.float32),
        grid=(pl.cdiv(n, tm),),
        in_specs=[
            pl.BlockSpec((tm, f), lambda i: (i, 0)),
            pl.BlockSpec((f, bsz), lambda i: (0, 0)),
            pl.BlockSpec((1, bsz), lambda i: (0, 0)),
        ],
        out_specs=pl.BlockSpec((tm, bsz), lambda i: (i, 0)),
        compiler_params=pltpu.CompilerParams(dimension_semantics=("parallel",)),
        cost_estimate=cost,
    )(x, w, b)


def box_decoder_matmul_fm(x_fm, weight, bias_col):
    """Feature-major bulk path.  x_fm: (F, N), weight: (B, F), bias_col: (B, 1) -> (B, N)."""
    f, n = x_fm.shape
    bsz = weight.shape[0]
    w = weight.astype(x_fm.dtype)
    b = bias_col.astype(jnp.float32)
    x_isz = jnp.dtype(x_fm.dtype).itemsize

    cost = pl.CostEstimate(
        flops=2 * n * f * bsz,
        transcendentals=n * bsz,
        bytes_accessed=x_isz * n * f + x_isz * f * bsz + 4 * bsz + 4 * n * bsz,
    )

    # Per-column VMEM: sublane padding only (lane dim is N and fully dense).
    per_col = _pad_to(f, 8) * x_isz + _pad_to(bsz, 8) * 4
    gridless_cols = int(min(_ROW_TILE * _MIN_GRID_BLOCKS, _VMEM_BUDGET // per_col))

    if n <= gridless_cols:
        needed = n * per_col + (1 << 20)
        return pl.pallas_call(
            _box_decoder_fm_kernel,
            out_shape=jax.ShapeDtypeStruct((bsz, n), jnp.float32),
            in_specs=[pl.BlockSpec(memory_space=pltpu.MemorySpace.VMEM)] * 3,
            out_specs=pl.BlockSpec(memory_space=pltpu.MemorySpace.VMEM),
            compiler_params=pltpu.CompilerParams(
                vmem_limit_bytes=_gridless_vmem_limit(needed)),
            cost_estimate=cost,
        )(x_fm, w, b)

    tn = _ROW_TILE
    return pl.pallas_call(
        _box_decoder_fm_kernel,
        out_shape=jax.ShapeDtypeStruct((bsz, n), jnp.float32),
        grid=(pl.cdiv(n, tn),),
        in_specs=[
            pl.BlockSpec((f, tn), lambda i: (0, i)),
            pl.BlockSpec((bsz, f), lambda i: (0, 0)),
            pl.BlockSpec((bsz, 1), lambda i: (0, 0)),
        ],
        out_specs=pl.BlockSpec((bsz, tn), lambda i: (0, i)),
        compiler_params=pltpu.CompilerParams(dimension_semantics=("parallel",)),
        cost_estimate=cost,
    )(x_fm, w, b)


# ---------------------------------------------------------------------------
# jitted forward paths (single dispatch per call)
# ---------------------------------------------------------------------------
@jax.jit
def _decode_slab_j(weight_t, bias_row, x):
    return box_decoder_matmul(x, weight_t, bias_row)


@jax.jit
def _decode_slab_fm_j(weight, bias_col, x_fm):
    return box_decoder_matmul_fm(x_fm, weight, bias_col)


@jax.jit
def _decode_from_parts_j(weight_t, bias_row, parts):
    slab = jnp.concatenate(parts, axis=0)                 # fused under the same jit
    out = box_decoder_matmul(slab, weight_t, bias_row)
    # Split inside the jit: one dispatch yields all (1, B) outputs instead of
    # 1 + N host-side slicing ops.  (Retraces per distinct number of parents.)
    return list(jnp.split(out, out.shape[0], axis=0))


# ---------------------------------------------------------------------------
# Module-level wrapper reproducing bundle / decode / tanh / unbundle
# ---------------------------------------------------------------------------
def bundle(inputs):
    if inputs is None:
        return None
    return jnp.concatenate(tuple(inputs), axis=0)


def unbundle(x):
    if x is None:
        return itertools.repeat(None)
    return list(jnp.split(x, x.shape[0], axis=0))


class BoxDecoder:
    """JAX/Pallas port of the PyTorch BoxDecoder (Linear + Tanh over bundled rows)."""

    def __init__(self, boxSize, featureSize, key):
        kw, kb = jax.random.split(key)
        # PyTorch nn.Linear default init: U(-1/sqrt(fan_in), 1/sqrt(fan_in))
        bound = 1.0 / math.sqrt(featureSize)
        weight = jax.random.uniform(kw, (boxSize, featureSize), jnp.float32, -bound, bound)
        bias = jax.random.uniform(kb, (boxSize,), jnp.float32, -bound, bound)
        self.weight = weight                  # (B, F)  PyTorch layout (fm path operand)
        self.weight_t = weight.T              # (F, B)  row-major matmul operand
        self.bias = bias
        self.bias_row = bias[None, :]         # (1, B)
        self.bias_col = bias[:, None]         # (B, 1)

    def decode_slab(self, x_slab, operand_dtype=None):
        """Bulk path: (N, F) -> (N, B) f32.  Supply a bf16 slab (produced upstream)
        to halve HBM traffic on the tiled large-N path; accumulate/tanh stay f32."""
        if operand_dtype is not None and x_slab.dtype != operand_dtype:
            # Note: casting here adds a separate full pass over the slab; prefer
            # producing the slab in the target dtype upstream.
            x_slab = x_slab.astype(operand_dtype)
        return _decode_slab_j(self.weight_t, self.bias_row, x_slab)

    def decode_slab_fm(self, x_fm):
        """Feature-major bulk path: (F, N) -> (B, N) f32 with lane-dense stores."""
        return _decode_slab_fm_j(self.weight, self.bias_col, x_fm)

    def __call__(self, parent_in):
        if parent_in is None:
            return unbundle(None)
        parts = tuple(parent_in)
        return _decode_from_parts_j(self.weight_t, self.bias_row, parts)


# ---------------------------------------------------------------------------
if __name__ == "__main__":
    featureSize = 32
    boxSize = 12
    n_parents = 8

    key = jax.random.PRNGKey(0)
    k_model, k_small, k_mid, k_big = jax.random.split(key, 4)

    decoder = BoxDecoder(boxSize, featureSize, k_model)

    # 1) list-of-(1, F) module contract (small N, gridless f32 path, one dispatch)
    data = jax.random.normal(k_small, (n_parents, featureSize), jnp.float32)
    parent_in = [data[i : i + 1] for i in range(n_parents)]
    outs = decoder(parent_in)
    outs = [jax.block_until_ready(o) for o in outs]
    got = jnp.concatenate(outs, axis=0)
    ref = jnp.tanh(data @ decoder.weight_t + decoder.bias)
    assert got.shape == (n_parents, boxSize)
    assert all(o.shape == (1, boxSize) for o in outs)
    assert jnp.allclose(got, ref, atol=1e-5, rtol=1e-5)

    # 2) gridless slab path (medium N, f32)
    mid = jax.random.normal(k_mid, (512, featureSize), jnp.float32)
    mid_out = jax.block_until_ready(decoder.decode_slab(mid))
    mid_ref = jnp.tanh(mid @ decoder.weight_t + decoder.bias)
    assert mid_out.shape == (512, boxSize)
    assert jnp.allclose(mid_out, mid_ref, atol=1e-5, rtol=1e-5)

    # 3) row-tiled grid path (large N, bf16 operands, f32 epilogue)
    n_big = _ROW_TILE * (_MIN_GRID_BLOCKS + 4)          # forces the tiled branch
    big_f32 = jax.random.normal(k_big, (n_big, featureSize), jnp.float32)
    big = big_f32.astype(jnp.bfloat16)                  # slab "produced upstream" in bf16
    big_out = jax.block_until_ready(decoder.decode_slab(big))
    big_ref = jnp.tanh(big_f32 @ decoder.weight_t + decoder.bias)
    assert big_out.shape == (n_big, boxSize)
    assert big_out.dtype == jnp.float32
    assert jnp.allclose(big_out, big_ref, atol=3e-2, rtol=3e-2)

    # 4) feature-major, lane-dense bulk variant
    fm = jnp.transpose(mid)                             # (F, 512)
    fm_out = jax.block_until_ready(decoder.decode_slab_fm(fm))
    assert fm_out.shape == (boxSize, 512)
    assert jnp.allclose(fm_out, mid_ref.T, atol=1e-5, rtol=1e-5)

    print("KERNEL_OK")
</pallas_src>

<mosaic_0001>
module attributes {stable_mosaic.version = 11 : i64} {
  func.func @_box_decoder_kernel(%arg0: memref<8x32xf32, #tpu.memory_space<vmem>>, %arg1: memref<32x12xf32, #tpu.memory_space<vmem>>, %arg2: memref<1x12xf32, #tpu.memory_space<vmem>>, %arg3: memref<8x12xf32, #tpu.memory_space<vmem>>) attributes {dimension_semantics = [], scalar_prefetch = 0 : i64, scratch_operands = 0 : i64, tpu.core_type = #tpu.core_type<tc>} {
    %c0 = arith.constant 0 : index
    %c0_0 = arith.constant 0 : index
    %0 = vector.load %arg0[%c0, %c0_0] : memref<8x32xf32, #tpu.memory_space<vmem>>, vector<8x32xf32>
    %c0_1 = arith.constant 0 : index
    %c0_2 = arith.constant 0 : index
    %1 = vector.load %arg1[%c0_1, %c0_2] : memref<32x12xf32, #tpu.memory_space<vmem>>, vector<32x12xf32>
    %cst = arith.constant dense<0.000000e+00> : vector<8x12xf32>
    %2 = tpu.matmul %0, %1, %cst {dimension_numbers = #tpu.dot_dimension_numbers<[1], [0], [0], [1], [0, 0, 1, 1], [], []>} : vector<8x32xf32>, vector<32x12xf32>, vector<8x12xf32> -> vector<8x12xf32>
    %c0_3 = arith.constant 0 : index
    %c0_4 = arith.constant 0 : index
    %3 = vector.load %arg2[%c0_3, %c0_4] : memref<1x12xf32, #tpu.memory_space<vmem>>, vector<1x12xf32>
    %4 = vector.broadcast %3 : vector<1x12xf32> to vector<8x12xf32>
    %5 = arith.addf %2, %4 : vector<8x12xf32>
    %6 = math.tanh %5 : vector<8x12xf32>
    %c0_5 = arith.constant 0 : index
    %c0_6 = arith.constant 0 : index
    %7 = vector.load %arg3[%c0_5, %c0_6] : memref<8x12xf32, #tpu.memory_space<vmem>>, vector<8x12xf32>
    tpu.vector_store %arg3[%c0_5, %c0_6], %6 {strides = array<i32>} : memref<8x12xf32, #tpu.memory_space<vmem>>, vector<8x12xf32>,
    return
  }
}

</mosaic_0001>

<bundles_post_ra>
// kernel: _decode_from_parts_j.1
= control target key start
LH: loop header
LB: loop body
LE: loop exit
PB: predicated region body
PF: predicated region fallthrough
CT: control target
= control target key end

     0   :  { %v136_v0 = vmov 0.0|0.0   ;;  %vm137_vm0 = vmmov 0   ;;  %v138_v4 = vmov 0.0   ;;  %vm26_vm1 = vcmask 261120   ;;  %s180_s1 = inlined_call_operand.vmem [shape: f32[32,12], index: 1, kind: input, shape index: {}]   ;;  %s181_s0 = inlined_call_operand.vmem [shape: f32[8,32], index: 0, kind: input, shape index: {}]   ;;  %s182_s2 = inlined_call_operand.vmem [shape: f32[1,12], index: 2, kind: input, shape index: {}]   ;;  %s183_s3 = inlined_call_operand.vmem [shape: f32[8,12], index: 3, kind: output, shape index: {}]  }
   0x1   :  { %125 = vmatprep.subr.bf16.mxu0 %v136_v0  ;;  %v15_v1 = vld [vmem:[%s180_s1] sm:$0xff]  ;;  %v16_v2 = vld [vmem:[%s180_s1 + $0x8] sm:$0xff]  ;;  %v17_v3 = vld [vmem:[%s180_s1 + $0x10] sm:$0xff]  ;;  %122 = vmatprep.mubr.msk.f32.mxu0 %vm137_vm0, %v138_v4  ;;  %vm101_vm2 = vcmask 97280  }
   0x2   :  { %v126_v5 = vpack.c.bf16 %v16_v2, %v15_v1  ;;  %v18_v6 = vld [vmem:[%s180_s1 + $0x18] sm:$0xff]  ;;  %v14_v8 = vld [vmem:[%s181_s0] sm:$0xff] }
   0x3   :  { %v129_v7 = vpack.c.bf16 %v18_v6, %v17_v3  ;;  %v107_v9 = vld [vmem:[%s182_s2] ss:$0 sm:$0xff] }
   0x4   :  { %127 = vmatpush3.bf16.msra.mxu0 %v126_v5 }
   0x5   :  { %128 = vmatprep.subr.bf16.mxu0 %v136_v0 }
   0x8   :  { %130 = vmatpush3.bf16.msra.mxu0 %v129_v7 }
   0xb   :  { %123 = vmatmul.mubr.msk.f32.vlgmr.msra.gmra.mrb[0].mxu0 %vm26_vm1, %v14_v8 }
  0xde   :  { %v96_v10 = vpop.f32.mrb[0].mxu0 }
  0xdf   :  { %v97_v11 = vadd.f32 %v107_v9, %v96_v10  ;;  %v124_v12 = vpop.f32.mrb[1].mxu0 }
  0xe1   :  { %134 = vtanh.f32 %v97_v11 }
  0xeb   :  { %v135_v13 = vpop.eup %134 }
  0xec   :  { %102 = vst.msk [vmem:[%s183_s3] sm:$0xff] %vm101_vm2, %v135_v13 }

</bundles_post_ra>
